<compile_context>
chip_gen: v7x
topology: tpu7x:2x2x1
jax: 0.10.0
libtpu: 0.0.40
codegen_flags: <defaults>
</compile_context>

<pallas_src>
import jax
import jax.numpy as jnp
from jax.experimental import pallas as pl
from jax.experimental.pallas import tpu as pltpu


def _predictor_kernel(idx_ref,
                      aug_tab_t_ref, cls_tab_t_ref,
                      w0a_ref, w0b_ref, b0_ref,
                      w1_ref, b1_ref, w2_ref, b2_ref,
                      wo_col_ref, bo_ref,
                      out_ref):
    tb = out_ref.shape[1]                       # batch tile (lane axis)

    aug_tab = aug_tab_t_ref[...]                # [E, n_aug] (matmul dtype)
    cls_tab = cls_tab_t_ref[...]                # [E, n_cls]
    mdt = aug_tab.dtype                         # MXU operand dtype (bf16 or f32)
    n_aug = aug_tab.shape[1]
    n_cls = cls_tab.shape[1]

    # Single aligned index slab; static row slices (no per-row DMAs).
    a1 = idx_ref[0:1, :]                        # [1, TB] int32
    a2 = idx_ref[1:2, :]
    cls_i = idx_ref[2:3, :]

    # ---- Fused aug gather: ONE iota reused for both compares, one matmul. ----
    iota_aug = jax.lax.broadcasted_iota(jnp.int32, (n_aug, tb), 0)
    oh_aug = (jnp.where(iota_aug == a1, 1.0, 0.0)
              + jnp.where(iota_aug == a2, 1.0, 0.0)).astype(mdt)   # single cast
    aug_emb = jnp.dot(aug_tab, oh_aug,
                      preferred_element_type=jnp.float32)          # [E, TB] f32

    # ---- cls gather: one-hot emitted directly in the matmul dtype. ----
    iota_cls = jax.lax.broadcasted_iota(jnp.int32, (n_cls, tb), 0)
    oh_cls = jnp.where(iota_cls == cls_i,
                       jnp.ones((), mdt), jnp.zeros((), mdt))      # [n_cls, TB]
    cls_emb = jnp.dot(cls_tab, oh_cls,
                      preferred_element_type=jnp.float32)          # [E, TB] f32

    # ---- Layer 0 without a concat: W0 split into aug / cls halves. ----
    h = (jnp.dot(w0a_ref[...], aug_emb.astype(mdt),
                 preferred_element_type=jnp.float32)
         + jnp.dot(w0b_ref[...], cls_emb.astype(mdt),
                   preferred_element_type=jnp.float32)
         + b0_ref[...])
    h = jnp.maximum(h, 0.0)
    h = jnp.maximum(jnp.dot(w1_ref[...], h.astype(mdt),
                            preferred_element_type=jnp.float32) + b1_ref[...], 0.0)
    h = jnp.maximum(jnp.dot(w2_ref[...], h.astype(mdt),
                            preferred_element_type=jnp.float32) + b2_ref[...], 0.0)

    # ---- Output layer on the VPU/XLU (1-row matmul wastes the MXU). ----
    out_ref[...] = (jnp.sum(wo_col_ref[...] * h, axis=0, keepdims=True)
                    + bo_ref[...])                                 # [1, TB] f32


def prepare_params(params, matmul_dtype=jnp.bfloat16):
    """Hoist all weight-layout transforms / dtype casts out of the per-call path."""
    E = params["aug_table"].shape[1]
    mdt = matmul_dtype
    return dict(
        aug_tab_t=params["aug_table"].T.astype(mdt),          # [E, n_aug]
        cls_tab_t=params["cls_table"].T.astype(mdt),          # [E, n_cls]
        w0a=params["w0"][:, :E].astype(mdt),                  # [H, E]
        w0b=params["w0"][:, E:].astype(mdt),                  # [H, E]
        b0=params["b0"][:, None].astype(jnp.float32),         # [H, 1]
        w1=params["w1"].astype(mdt),
        b1=params["b1"][:, None].astype(jnp.float32),
        w2=params["w2"].astype(mdt),
        b2=params["b2"][:, None].astype(jnp.float32),
        wo_col=params["wo"].T.astype(jnp.float32),             # [H, 1] (VPU path)
        bo=params["bo"][:, None].astype(jnp.float32),          # [1, 1]
    )


def neural_predictor_forward(x_idx, prepped, *, tile_b=2048):
    """x_idx: [B, 3] int32 (aug1, aug2, cls). prepped: output of prepare_params."""
    B = x_idx.shape[0]

    if B <= tile_b:
        if B >= 256:
            # Force >= 2 grid blocks so the "parallel" batch axis can shard
            # across v7x's two TensorCores (extra step is ~0.35us on 1-TC chips).
            tb = pl.cdiv(pl.cdiv(B, 2), 128) * 128
        else:
            tb = B                               # single tiny block
    else:
        tb = tile_b
    b_pad = pl.cdiv(B, tb) * tb

    # One aligned [8, B_pad] int32 index slab (rows 0/1/2 = aug1/aug2/cls).
    idx_t = jnp.transpose(x_idx.astype(jnp.int32))            # [3, B]
    idx_t = jnp.pad(idx_t, ((0, 5), (0, b_pad - B)))          # [8, B_pad]

    H = prepped["w1"].shape[0]
    E = prepped["aug_tab_t"].shape[0]
    n_aug = prepped["aug_tab_t"].shape[1]
    n_cls = prepped["cls_tab_t"].shape[1]

    args = (idx_t,
            prepped["aug_tab_t"], prepped["cls_tab_t"],
            prepped["w0a"], prepped["w0b"], prepped["b0"],
            prepped["w1"], prepped["b1"], prepped["w2"], prepped["b2"],
            prepped["wo_col"], prepped["bo"])

    tiled = lambda i: (0, i)
    resident = lambda i: (0, 0)
    in_specs = ([pl.BlockSpec((8, tb), tiled)]
                + [pl.BlockSpec(a.shape, resident) for a in args[1:]])

    flops = 2 * b_pad * (n_aug * E + n_cls * E + 2 * E * H + 2 * H * H + H)
    bytes_accessed = int(idx_t.nbytes) + 4 * b_pad + sum(int(a.nbytes) for a in args[1:])
    cost = pl.CostEstimate(flops=flops, transcendentals=0,
                           bytes_accessed=bytes_accessed)

    y_t = pl.pallas_call(
        _predictor_kernel,
        out_shape=jax.ShapeDtypeStruct((1, b_pad), jnp.float32),
        grid_spec=pltpu.PrefetchScalarGridSpec(
            num_scalar_prefetch=0,
            grid=(b_pad // tb,),
            in_specs=in_specs,
            out_specs=pl.BlockSpec((1, tb), tiled),
        ),
        compiler_params=pltpu.CompilerParams(
            dimension_semantics=("parallel",)),
        cost_estimate=cost,
    )(*args)

    return y_t[:, :B].T                                        # [B, 1]


def init_params(key, num_augs, num_cls, embed_dim, linear_hidden):
    """Synthetic init mirroring the PyTorch module (native [out, in] weights)."""
    ks = jax.random.split(key, 10)

    aug_table = jax.random.normal(ks[0], (num_augs, embed_dim), jnp.float32)
    aug_table = aug_table.at[num_augs - 1].set(0.0)     # padding_idx row is zero
    cls_table = jax.random.normal(ks[1], (num_cls, embed_dim), jnp.float32)

    def linear(kw, kb, fan_in, fan_out):
        bound = 1.0 / jnp.sqrt(jnp.float32(fan_in))
        w = jax.random.uniform(kw, (fan_out, fan_in), jnp.float32, -bound, bound)
        b = jax.random.uniform(kb, (fan_out,), jnp.float32, -bound, bound)
        return w, b

    w0, b0 = linear(ks[2], ks[3], embed_dim * 2, linear_hidden)
    w1, b1 = linear(ks[4], ks[5], linear_hidden, linear_hidden)
    w2, b2 = linear(ks[6], ks[7], linear_hidden, linear_hidden)
    wo, bo = linear(ks[8], ks[9], linear_hidden, 1)

    return dict(aug_table=aug_table, cls_table=cls_table,
                w0=w0, b0=b0, w1=w1, b1=b1, w2=w2, b2=b2, wo=wo, bo=bo)


def reference_forward(x_idx, p, matmul_dtype=jnp.float32):
    """Pure-JAX reference.  With matmul_dtype=bf16 it mirrors the kernel's
    bf16-MXU / f32-accumulation path; with f32 it is the exact module forward."""
    mdt = matmul_dtype
    at = p["aug_table"].astype(mdt)
    ct = p["cls_table"].astype(mdt)
    aug_emb = (at[x_idx[:, 0]].astype(jnp.float32)
               + at[x_idx[:, 1]].astype(jnp.float32))
    cls_emb = ct[x_idx[:, 2]].astype(jnp.float32)

    def dense(h, w, b):
        return jnp.dot(h.astype(mdt), w.astype(mdt).T,
                       preferred_element_type=jnp.float32) + b

    h = jnp.concatenate([aug_emb, cls_emb], axis=1)
    h = jnp.maximum(dense(h, p["w0"], p["b0"]), 0.0)
    h = jnp.maximum(dense(h, p["w1"], p["b1"]), 0.0)
    h = jnp.maximum(dense(h, p["w2"], p["b2"]), 0.0)
    return jnp.dot(h, p["wo"].T) + p["bo"]       # output layer kept in f32


if __name__ == "__main__":
    # Small shapes consistent with the module (defaults scaled down).
    B = 8
    NUM_AUGS = 16
    NUM_CLS = 32
    EMBED_DIM = 32
    LINEAR_HIDDEN = 32

    key = jax.random.PRNGKey(0)
    kp, ka1, ka2, kc = jax.random.split(key, 4)

    params = init_params(kp, NUM_AUGS, NUM_CLS, EMBED_DIM, LINEAR_HIDDEN)

    aug1 = jax.random.randint(ka1, (B, 1), 0, NUM_AUGS, dtype=jnp.int32)
    aug2 = jax.random.randint(ka2, (B, 1), 0, NUM_AUGS, dtype=jnp.int32)
    cls_idx = jax.random.randint(kc, (B, 1), 0, NUM_CLS, dtype=jnp.int32)
    x = jnp.concatenate([aug1, aug2, cls_idx], axis=1)   # [B, 3] int32

    # 1) Exact (f32-MXU) path vs the module reference.
    prepped_f32 = prepare_params(params, matmul_dtype=jnp.float32)
    y_f32 = jax.block_until_ready(neural_predictor_forward(x, prepped_f32))
    y_ref = jax.block_until_ready(reference_forward(x, params, jnp.float32))
    assert y_f32.shape == (B, 1), y_f32.shape
    assert jnp.allclose(y_f32, y_ref, atol=1e-4, rtol=1e-4), (y_f32, y_ref)

    # 2) Default bf16-MXU path vs a reference that mirrors the same quantization.
    prepped_bf16 = prepare_params(params, matmul_dtype=jnp.bfloat16)
    y_bf16 = jax.block_until_ready(neural_predictor_forward(x, prepped_bf16))
    y_ref_bf16 = jax.block_until_ready(reference_forward(x, params, jnp.bfloat16))
    assert y_bf16.shape == (B, 1), y_bf16.shape
    assert jnp.allclose(y_bf16, y_ref_bf16, atol=2e-3, rtol=2e-3), (y_bf16, y_ref_bf16)

    print("KERNEL_OK")
</pallas_src>

<mosaic_0001>
module attributes {stable_mosaic.version = 11 : i64} {
  func.func @_predictor_kernel(%arg0: i32, %arg1: memref<8x8xi32, #tpu.memory_space<vmem>>, %arg2: memref<32x16xf32, #tpu.memory_space<vmem>>, %arg3: memref<32x32xf32, #tpu.memory_space<vmem>>, %arg4: memref<32x32xf32, #tpu.memory_space<vmem>>, %arg5: memref<32x32xf32, #tpu.memory_space<vmem>>, %arg6: memref<32x1xf32, #tpu.memory_space<vmem>>, %arg7: memref<32x32xf32, #tpu.memory_space<vmem>>, %arg8: memref<32x1xf32, #tpu.memory_space<vmem>>, %arg9: memref<32x32xf32, #tpu.memory_space<vmem>>, %arg10: memref<32x1xf32, #tpu.memory_space<vmem>>, %arg11: memref<32x1xf32, #tpu.memory_space<vmem>>, %arg12: memref<1x1xf32, #tpu.memory_space<vmem>>, %arg13: memref<1x8xf32, #tpu.memory_space<vmem>>) attributes {dimension_semantics = [#tpu.dimension_semantics<parallel>], iteration_bounds = array<i64: 1>, scalar_prefetch = 0 : i64, scratch_operands = 0 : i64, tpu.core_type = #tpu.core_type<tc>, window_params = [{transform_indices = @transform_0, window_bounds = array<i64: 8, 8>}, {pipeline_mode = #tpu.pipeline_mode<synchronous>, transform_indices = @transform_1, window_bounds = array<i64: 32, 16>}, {pipeline_mode = #tpu.pipeline_mode<synchronous>, transform_indices = @transform_2, window_bounds = array<i64: 32, 32>}, {pipeline_mode = #tpu.pipeline_mode<synchronous>, transform_indices = @transform_3, window_bounds = array<i64: 32, 32>}, {pipeline_mode = #tpu.pipeline_mode<synchronous>, transform_indices = @transform_4, window_bounds = array<i64: 32, 32>}, {pipeline_mode = #tpu.pipeline_mode<synchronous>, transform_indices = @transform_5, window_bounds = array<i64: 32, 1>}, {pipeline_mode = #tpu.pipeline_mode<synchronous>, transform_indices = @transform_6, window_bounds = array<i64: 32, 32>}, {pipeline_mode = #tpu.pipeline_mode<synchronous>, transform_indices = @transform_7, window_bounds = array<i64: 32, 1>}, {pipeline_mode = #tpu.pipeline_mode<synchronous>, transform_indices = @transform_8, window_bounds = array<i64: 32, 32>}, {pipeline_mode = #tpu.pipeline_mode<synchronous>, transform_indices = @transform_9, window_bounds = array<i64: 32, 1>}, {pipeline_mode = #tpu.pipeline_mode<synchronous>, transform_indices = @transform_10, window_bounds = array<i64: 32, 1>}, {pipeline_mode = #tpu.pipeline_mode<synchronous>, transform_indices = @transform_11, window_bounds = array<i64: 1, 1>}, {transform_indices = @transform_12, window_bounds = array<i64: 1, 8>}]} {
    %c0 = arith.constant 0 : index
    %c0_0 = arith.constant 0 : index
    %0 = vector.load %arg2[%c0, %c0_0] : memref<32x16xf32, #tpu.memory_space<vmem>>, vector<32x16xf32>
    %c0_1 = arith.constant 0 : index
    %c0_2 = arith.constant 0 : index
    %1 = vector.load %arg3[%c0_1, %c0_2] : memref<32x32xf32, #tpu.memory_space<vmem>>, vector<32x32xf32>
    %c0_3 = arith.constant 0 : index
    %c0_4 = arith.constant 0 : index
    %2 = vector.load %arg1[%c0_3, %c0_4] : memref<8x8xi32, #tpu.memory_space<vmem>>, vector<1x8xi32>
    %c1 = arith.constant 1 : index
    %c0_5 = arith.constant 0 : index
    %3 = vector.load %arg1[%c1, %c0_5] : memref<8x8xi32, #tpu.memory_space<vmem>>, vector<1x8xi32>
    %c2 = arith.constant 2 : index
    %c0_6 = arith.constant 0 : index
    %4 = vector.load %arg1[%c2, %c0_6] : memref<8x8xi32, #tpu.memory_space<vmem>>, vector<1x8xi32>
    %5 = tpu.iota {dimensions = array<i32: 0>} : vector<16x8xi32>
    %6 = vector.broadcast %2 : vector<1x8xi32> to vector<16x8xi32>
    %7 = arith.cmpi eq, %5, %6 : vector<16x8xi32>
    %cst = arith.constant 1.000000e+00 : f32
    %cst_7 = arith.constant 0.000000e+00 : f32
    %8 = vector.broadcast %cst : f32 to vector<16x8xf32>
    %9 = vector.broadcast %cst_7 : f32 to vector<16x8xf32>
    %10 = arith.select %7, %8, %9 : vector<16x8xi1>, vector<16x8xf32>
    %11 = vector.broadcast %3 : vector<1x8xi32> to vector<16x8xi32>
    %12 = arith.cmpi eq, %5, %11 : vector<16x8xi32>
    %cst_8 = arith.constant 1.000000e+00 : f32
    %cst_9 = arith.constant 0.000000e+00 : f32
    %13 = vector.broadcast %cst_8 : f32 to vector<16x8xf32>
    %14 = vector.broadcast %cst_9 : f32 to vector<16x8xf32>
    %15 = arith.select %12, %13, %14 : vector<16x8xi1>, vector<16x8xf32>
    %16 = arith.addf %10, %15 : vector<16x8xf32>
    %cst_10 = arith.constant dense<0.000000e+00> : vector<32x8xf32>
    %17 = tpu.matmul %0, %16, %cst_10 {dimension_numbers = #tpu.dot_dimension_numbers<[1], [0], [0], [1], [0, 0, 1, 1], [], []>} : vector<32x16xf32>, vector<16x8xf32>, vector<32x8xf32> -> vector<32x8xf32>
    %18 = tpu.iota {dimensions = array<i32: 0>} : vector<32x8xi32>
    %19 = vector.broadcast %4 : vector<1x8xi32> to vector<32x8xi32>
    %20 = arith.cmpi eq, %18, %19 : vector<32x8xi32>
    %cst_11 = arith.constant 1.000000e+00 : f32
    %cst_12 = arith.constant 0.000000e+00 : f32
    %21 = vector.broadcast %cst_11 : f32 to vector<32x8xf32>
    %22 = vector.broadcast %cst_12 : f32 to vector<32x8xf32>
    %23 = arith.select %20, %21, %22 : vector<32x8xi1>, vector<32x8xf32>
    %cst_13 = arith.constant dense<0.000000e+00> : vector<32x8xf32>
    %24 = tpu.matmul %1, %23, %cst_13 {dimension_numbers = #tpu.dot_dimension_numbers<[1], [0], [0], [1], [0, 0, 1, 1], [], []>} : vector<32x32xf32>, vector<32x8xf32>, vector<32x8xf32> -> vector<32x8xf32>
    %c0_14 = arith.constant 0 : index
    %c0_15 = arith.constant 0 : index
    %25 = vector.load %arg4[%c0_14, %c0_15] : memref<32x32xf32, #tpu.memory_space<vmem>>, vector<32x32xf32>
    %cst_16 = arith.constant dense<0.000000e+00> : vector<32x8xf32>
    %26 = tpu.matmul %25, %17, %cst_16 {dimension_numbers = #tpu.dot_dimension_numbers<[1], [0], [0], [1], [0, 0, 1, 1], [], []>} : vector<32x32xf32>, vector<32x8xf32>, vector<32x8xf32> -> vector<32x8xf32>
    %c0_17 = arith.constant 0 : index
    %c0_18 = arith.constant 0 : index
    %27 = vector.load %arg5[%c0_17, %c0_18] : memref<32x32xf32, #tpu.memory_space<vmem>>, vector<32x32xf32>
    %cst_19 = arith.constant dense<0.000000e+00> : vector<32x8xf32>
    %28 = tpu.matmul %27, %24, %cst_19 {dimension_numbers = #tpu.dot_dimension_numbers<[1], [0], [0], [1], [0, 0, 1, 1], [], []>} : vector<32x32xf32>, vector<32x8xf32>, vector<32x8xf32> -> vector<32x8xf32>
    %29 = arith.addf %26, %28 : vector<32x8xf32>
    %c0_20 = arith.constant 0 : index
    %c0_21 = arith.constant 0 : index
    %30 = vector.load %arg6[%c0_20, %c0_21] : memref<32x1xf32, #tpu.memory_space<vmem>>, vector<32x1xf32>
    %31 = vector.broadcast %30 : vector<32x1xf32> to vector<32x8xf32>
    %32 = arith.addf %29, %31 : vector<32x8xf32>
    %cst_22 = arith.constant 0.000000e+00 : f32
    %33 = vector.broadcast %cst_22 : f32 to vector<32x8xf32>
    %34 = arith.maximumf %32, %33 : vector<32x8xf32>
    %c0_23 = arith.constant 0 : index
    %c0_24 = arith.constant 0 : index
    %35 = vector.load %arg7[%c0_23, %c0_24] : memref<32x32xf32, #tpu.memory_space<vmem>>, vector<32x32xf32>
    %cst_25 = arith.constant dense<0.000000e+00> : vector<32x8xf32>
    %36 = tpu.matmul %35, %34, %cst_25 {dimension_numbers = #tpu.dot_dimension_numbers<[1], [0], [0], [1], [0, 0, 1, 1], [], []>} : vector<32x32xf32>, vector<32x8xf32>, vector<32x8xf32> -> vector<32x8xf32>
    %c0_26 = arith.constant 0 : index
    %c0_27 = arith.constant 0 : index
    %37 = vector.load %arg8[%c0_26, %c0_27] : memref<32x1xf32, #tpu.memory_space<vmem>>, vector<32x1xf32>
    %38 = vector.broadcast %37 : vector<32x1xf32> to vector<32x8xf32>
    %39 = arith.addf %36, %38 : vector<32x8xf32>
    %cst_28 = arith.constant 0.000000e+00 : f32
    %40 = vector.broadcast %cst_28 : f32 to vector<32x8xf32>
    %41 = arith.maximumf %39, %40 : vector<32x8xf32>
    %c0_29 = arith.constant 0 : index
    %c0_30 = arith.constant 0 : index
    %42 = vector.load %arg9[%c0_29, %c0_30] : memref<32x32xf32, #tpu.memory_space<vmem>>, vector<32x32xf32>
    %cst_31 = arith.constant dense<0.000000e+00> : vector<32x8xf32>
    %43 = tpu.matmul %42, %41, %cst_31 {dimension_numbers = #tpu.dot_dimension_numbers<[1], [0], [0], [1], [0, 0, 1, 1], [], []>} : vector<32x32xf32>, vector<32x8xf32>, vector<32x8xf32> -> vector<32x8xf32>
    %c0_32 = arith.constant 0 : index
    %c0_33 = arith.constant 0 : index
    %44 = vector.load %arg10[%c0_32, %c0_33] : memref<32x1xf32, #tpu.memory_space<vmem>>, vector<32x1xf32>
    %45 = vector.broadcast %44 : vector<32x1xf32> to vector<32x8xf32>
    %46 = arith.addf %43, %45 : vector<32x8xf32>
    %cst_34 = arith.constant 0.000000e+00 : f32
    %47 = vector.broadcast %cst_34 : f32 to vector<32x8xf32>
    %48 = arith.maximumf %46, %47 : vector<32x8xf32>
    %c0_35 = arith.constant 0 : index
    %c0_36 = arith.constant 0 : index
    %49 = vector.load %arg11[%c0_35, %c0_36] : memref<32x1xf32, #tpu.memory_space<vmem>>, vector<32x1xf32>
    %50 = vector.broadcast %49 : vector<32x1xf32> to vector<32x8xf32>
    %51 = arith.mulf %50, %48 : vector<32x8xf32>
    %cst_37 = arith.constant dense<0.000000e+00> : vector<8xf32>
    %52 = vector.multi_reduction <add>, %51, %cst_37 [0] : vector<32x8xf32> to vector<8xf32>
    %53 = vector.shape_cast %52 : vector<8xf32> to vector<1x8xf32>
    %c0_38 = arith.constant 0 : index
    %c0_39 = arith.constant 0 : index
    %54 = vector.load %arg12[%c0_38, %c0_39] : memref<1x1xf32, #tpu.memory_space<vmem>>, vector<1x1xf32>
    %55 = vector.broadcast %54 : vector<1x1xf32> to vector<1x8xf32>
    %56 = arith.addf %53, %55 : vector<1x8xf32>
    %c0_40 = arith.constant 0 : index
    %c0_41 = arith.constant 0 : index
    %57 = vector.load %arg13[%c0_40, %c0_41] : memref<1x8xf32, #tpu.memory_space<vmem>>, vector<1x8xf32>
    tpu.vector_store %arg13[%c0_40, %c0_41], %56 {strides = array<i32>} : memref<1x8xf32, #tpu.memory_space<vmem>>, vector<1x8xf32>,
    return
  }
  func.func @transform_0(%arg0: i32) -> (i32, i32) {
    %c0_i32 = arith.constant 0 : i32
    %c0_i32_0 = arith.constant 0 : i32
    return %c0_i32, %arg0 : i32, i32
  }
  func.func @transform_1(%arg0: i32) -> (i32, i32) {
    %c0_i32 = arith.constant 0 : i32
    %c0_i32_0 = arith.constant 0 : i32
    %c0_i32_1 = arith.constant 0 : i32
    return %c0_i32, %c0_i32_0 : i32, i32
  }
  func.func @transform_2(%arg0: i32) -> (i32, i32) {
    %c0_i32 = arith.constant 0 : i32
    %c0_i32_0 = arith.constant 0 : i32
    %c0_i32_1 = arith.constant 0 : i32
    return %c0_i32, %c0_i32_0 : i32, i32
  }
  func.func @transform_3(%arg0: i32) -> (i32, i32) {
    %c0_i32 = arith.constant 0 : i32
    %c0_i32_0 = arith.constant 0 : i32
    %c0_i32_1 = arith.constant 0 : i32
    return %c0_i32, %c0_i32_0 : i32, i32
  }
  func.func @transform_4(%arg0: i32) -> (i32, i32) {
    %c0_i32 = arith.constant 0 : i32
    %c0_i32_0 = arith.constant 0 : i32
    %c0_i32_1 = arith.constant 0 : i32
    return %c0_i32, %c0_i32_0 : i32, i32
  }
  func.func @transform_5(%arg0: i32) -> (i32, i32) {
    %c0_i32 = arith.constant 0 : i32
    %c0_i32_0 = arith.constant 0 : i32
    %c0_i32_1 = arith.constant 0 : i32
    return %c0_i32, %c0_i32_0 : i32, i32
  }
  func.func @transform_6(%arg0: i32) -> (i32, i32) {
    %c0_i32 = arith.constant 0 : i32
    %c0_i32_0 = arith.constant 0 : i32
    %c0_i32_1 = arith.constant 0 : i32
    return %c0_i32, %c0_i32_0 : i32, i32
  }
  func.func @transform_7(%arg0: i32) -> (i32, i32) {
    %c0_i32 = arith.constant 0 : i32
    %c0_i32_0 = arith.constant 0 : i32
    %c0_i32_1 = arith.constant 0 : i32
    return %c0_i32, %c0_i32_0 : i32, i32
  }
  func.func @transform_8(%arg0: i32) -> (i32, i32) {
    %c0_i32 = arith.constant 0 : i32
    %c0_i32_0 = arith.constant 0 : i32
    %c0_i32_1 = arith.constant 0 : i32
    return %c0_i32, %c0_i32_0 : i32, i32
  }
  func.func @transform_9(%arg0: i32) -> (i32, i32) {
    %c0_i32 = arith.constant 0 : i32
    %c0_i32_0 = arith.constant 0 : i32
    %c0_i32_1 = arith.constant 0 : i32
    return %c0_i32, %c0_i32_0 : i32, i32
  }
  func.func @transform_10(%arg0: i32) -> (i32, i32) {
    %c0_i32 = arith.constant 0 : i32
    %c0_i32_0 = arith.constant 0 : i32
    %c0_i32_1 = arith.constant 0 : i32
    return %c0_i32, %c0_i32_0 : i32, i32
  }
  func.func @transform_11(%arg0: i32) -> (i32, i32) {
    %c0_i32 = arith.constant 0 : i32
    %c0_i32_0 = arith.constant 0 : i32
    %c0_i32_1 = arith.constant 0 : i32
    return %c0_i32, %c0_i32_0 : i32, i32
  }
  func.func @transform_12(%arg0: i32) -> (i32, i32) {
    %c0_i32 = arith.constant 0 : i32
    %c0_i32_0 = arith.constant 0 : i32
    return %c0_i32, %arg0 : i32, i32
  }
}

</mosaic_0001>

<bundles_post_ra>
// kernel: tpu_custom_call.1
= control target key start
LH: loop header
LB: loop body
LE: loop exit
PB: predicated region body
PF: predicated region fallthrough
CT: control target
= control target key end

     0   :  { %s1332_s0 = inlined_call_operand.vmem [shape: s32[8,8], index: 0, kind: input, shape index: {}]   ;;  %s1333_s1 = inlined_call_operand.vmem [shape: f32[32,16], index: 1, kind: input, shape index: {}]   ;;  %s1334_s2 = inlined_call_operand.vmem [shape: f32[32,32], index: 2, kind: input, shape index: {}]   ;;  %s1335_s3 = inlined_call_operand.vmem [shape: f32[32,32], index: 3, kind: input, shape index: {}]   ;;  %s1336_s4 = inlined_call_operand.vmem [shape: f32[32,32], index: 4, kind: input, shape index: {}]   ;;  %s1337_s5 = inlined_call_operand.vmem [shape: f32[32,1], index: 5, kind: input, shape index: {}]   ;;  %s1338_s6 = inlined_call_operand.vmem [shape: f32[32,32], index: 6, kind: input, shape index: {}]   ;;  %s1339_s7 = inlined_call_operand.vmem [shape: f32[32,1], index: 7, kind: input, shape index: {}]   ;;  %s1340_s8 = inlined_call_operand.vmem [shape: f32[32,32], index: 8, kind: input, shape index: {}]   ;;  %s1341_s9 = inlined_call_operand.vmem [shape: f32[32,1], index: 9, kind: input, shape index: {}]   ;;  %s1342_s10 = inlined_call_operand.vmem [shape: f32[32,1], index: 10, kind: input, shape index: {}]   ;;  %s1343_s11 = inlined_call_operand.<no memory space> [shape: f32[1,1], index: 11, kind: input, shape index: {}]   ;;  %s1344_s12 = inlined_call_operand.hbm [shape: f32[1,8], index: 12, kind: output, shape index: {}]  }
   0x1   :  { %v17_v0 = vstv %s1343_s11 }
   0x2   :  { %18 = vst [vmem:[#allocation2] sm:$0x1] %v17_v0 }
   0x3   :  { %v55_v1 = vlaneseq  ;;  %v48_v2 = vld [vmem:[%s1334_s2] sm:$0xff]  ;;  %vm188_vm0 = vcmask 261120   ;;  %vm76_vm1 = vcmask 130048  }
   0x4   :  { %v853_v3 = vld [vmem:[%s1332_s0 + $0x2] ss:$0 sm:$0xff]  ;;  %942 = vmatprep.mubr.msk.f32.mxu1 %vm188_vm0, %v48_v2  ;;  %v847_v4 = vld [vmem:[%s1332_s0] ss:$0 sm:$0xff]  ;;  %v848_v6 = vld [vmem:[%s1332_s0 + $0x1] ss:$0 sm:$0xff] }
   0x5   :  { %v1164_v5 = vshrl.u32 %v55_v1, 7  ;;  %v44_v7 = vld [vmem:[%s1333_s1] sm:$0xff] }
   0x6   :  { %928 = vmatprep.mubr.msk.f32.mxu0 %vm76_vm1, %v44_v7 }
   0x7   :  { %v57_v8 = vadd.s32 8, %v1164_v5  ;;  %vm180_vm2 = vcmp.eq.s32.totalorder %v1164_v5, %v853_v3  ;;  %v174_v9 = vadd.s32 16, %v1164_v5  ;;  %v175_v10 = vadd.s32 24, %v1164_v5 }
   0x8   :  { %19 = vsyncpa [#allocation4], 0  ;;  %vm62_vm3 = vcmp.eq.s32.totalorder %v1164_v5, %v847_v4  ;;  %vm70_vm4 = vcmp.eq.s32.totalorder %v1164_v5, %v848_v6  ;;  %v1082_v11 = vmov 0.0   ;;  %v1083_v15 = vmov 1.0|1.0   ;;  %v49_v20 = vld [vmem:[%s1334_s2 + $0x8] sm:$0xff] }
   0x9   :  { %vm181_vm5 = vcmp.eq.s32.totalorder %v57_v8, %v853_v3  ;;  %vm182_vm6 = vcmp.eq.s32.totalorder %v174_v9, %v853_v3  ;;  %vm183_vm7 = vcmp.eq.s32.totalorder %v175_v10, %v853_v3  ;;  %vm63_vm8 = vcmp.eq.s32.totalorder %v57_v8, %v847_v4  ;;  %v50_v21 = vld [vmem:[%s1334_s2 + $0x10] sm:$0xff]  ;;  %v45_v22 = vld [vmem:[%s1333_s1 + $0x8] sm:$0xff]  ;;  %v51_v24 = vld [vmem:[%s1334_s2 + $0x18] sm:$0xff] }
   0xa   :  { %vm1008_vm9 = vmpackc.low %vm181_vm5, %vm180_vm2  ;;  %v64_v12 = vsel %vm62_vm3, 1.0, %v1082_v11  ;;  %v65_v13 = vsel %vm63_vm8, 1.0, %v1082_v11  ;;  %vm71_vm10 = vcmp.eq.s32.totalorder %v57_v8, %v848_v6  ;;  %v72_v14 = vsel %vm70_vm4, 1.0, %v1082_v11  ;;  %v46_v23 = vld [vmem:[%s1333_s1 + $0x10] sm:$0xff]  ;;  %v47_v25 = vld [vmem:[%s1333_s1 + $0x18] sm:$0xff] }
   0xb   :  { %1009 = vmatprep.subr.msk.bf16.mxu1 %vm1008_vm9, %v1083_v15  ;;  %vm1012_vm11 = vmpackc.low %vm183_vm7, %vm182_vm6  ;;  %v73_v16 = vsel %vm71_vm10, 1.0, %v1082_v11  ;;  %v74_v17 = vadd.f32 %v72_v14, %v64_v12  ;;  %v290_v26 = vld [vmem:[%s1336_s4] sm:$0xff]  ;;  %v490_v28 = vld [vmem:[%s1337_s5 + $0x10] sm:$0xff]  ;;  %v1084_v29 = vmov 0   ;;  %vm806_vm12 = vcmask 64512  }
   0xc   :  { %1011 = vmatpush3.bf16.msk.msra.mxu1 %vm1008_vm9, %v1083_v15  ;;  %v75_v18 = vadd.f32 %v73_v16, %v65_v13  ;;  %v488_v27 = vld [vmem:[%s1337_s5] sm:$0xff]  ;;  %1056 = vset.pattern.permute.xlu0 %v1084_v29  ;;  %v489_v30 = vld [vmem:[%s1337_s5 + $0x8] sm:$0xff]  ;;  %v491_v31 = vld [vmem:[%s1337_s5 + $0x18] sm:$0xff]  ;;  %vm831_vm13 = vcmask 57344  }
   0xd   :  { %1013 = vmatprep.subr.msk.bf16.mxu1 %vm1012_vm11, %v1083_v15  ;;  %1057 = vset.pattern.permute.xlu1 %v1084_v29  ;;  %v524_v32 = vld [vmem:[%s1339_s7] sm:$0xff]  ;;  %v525_v33 = vld [vmem:[%s1339_s7 + $0x8] sm:$0xff]  ;;  %v526_v34 = vld [vmem:[%s1339_s7 + $0x10] sm:$0xff] }
   0xe   :  { %v1004_v19 = vpack.c.bf16 %v75_v18, %v74_v17  ;;  %494 = vperm.xlu0 %1056, %v488_v27   ;;  %504 = vperm.xlu1 %1057, %v490_v28   ;;  %v527_v35 = vld [vmem:[%s1339_s7 + $0x18] sm:$0xff]  ;;  %v653_v36 = vld [vmem:[%s1341_s9] sm:$0xff]  ;;  %v654_v37 = vld [vmem:[%s1341_s9 + $0x8] sm:$0xff] }
   0xf   :  { %v655_v38 = vld [vmem:[%s1341_s9 + $0x10] sm:$0xff]  ;;  %v656_v39 = vld [vmem:[%s1341_s9 + $0x18] sm:$0xff]  ;;  %v778_v40 = vld [vmem:[%s1342_s10] sm:$0xff] }
  0x10   :  { %1015 = vmatpush3.bf16.msk.msra.mxu1 %vm1012_vm11, %v1083_v15  ;;  %1005 = vmatprep.subr.bf16.mxu0 %v1004_v19  ;;  %v779_v41 = vld [vmem:[%s1342_s10 + $0x8] sm:$0xff]  ;;  %v780_v42 = vld [vmem:[%s1342_s10 + $0x10] sm:$0xff]  ;;  %v781_v43 = vld [vmem:[%s1342_s10 + $0x18] sm:$0xff] }
  0x11   :  { %1007 = vmatpush3.bf16.msra.mxu0 %v1004_v19  ;;  %v820_v44 = vld [vmem:[#allocation2] sm:$0x1]  ;;  %v291_v57 = vld [vmem:[%s1336_s4 + $0x8] sm:$0xff]  ;;  %v292_v58 = vld [vmem:[%s1336_s4 + $0x10] sm:$0xff] }
  0x12   :  { %499 = vperm.xlu0 %1056, %v489_v30   ;;  %509 = vperm.xlu1 %1057, %v491_v31   ;;  %v293_v59 = vld [vmem:[%s1336_s4 + $0x18] sm:$0xff]  ;;  %v286_v60 = vld [vmem:[%s1335_s3] sm:$0xff]  ;;  %v287_v61 = vld [vmem:[%s1335_s3 + $0x8] sm:$0xff] }
  0x13   :  { %943 = vmatmul.mubr.msk.f32.vlgmr.msra.gmra.mrb[0].mxu1 %vm188_vm0, %v49_v20  ;;  %v288_v62 = vld [vmem:[%s1335_s3 + $0x10] sm:$0xff]  ;;  %v289_v63 = vld [vmem:[%s1335_s3 + $0x18] sm:$0xff]  ;;  %v520_v0 = vld [vmem:[%s1338_s6] sm:$0xff] }
  0x14   :  { %945 = vmatprep.mubr.msk.f32.mxu1 %vm188_vm0, %v50_v21  ;;  %929 = vmatmul.mubr.msk.f32.vlgmr.msra.gmra.mrb[0].mxu0 %vm76_vm1, %v45_v22  ;;  %v521_v20 = vld [vmem:[%s1338_s6 + $0x8] sm:$0xff]  ;;  %v522_v21 = vld [vmem:[%s1338_s6 + $0x10] sm:$0xff]  ;;  %v523_v22 = vld [vmem:[%s1338_s6 + $0x18] sm:$0xff] }
  0x15   :  { %931 = vmatprep.mubr.msk.f32.mxu0 %vm76_vm1, %v46_v23  ;;  %v649_v23 = vld [vmem:[%s1340_s8] sm:$0xff] }
  0x16   :  { %530 = vperm.xlu0 %1056, %v524_v32   ;;  %535 = vperm.xlu1 %1057, %v525_v33  }
  0x17   :  { %946 = vmatmul.mubr.msk.f32.gmra.mrb[2].mxu1 %vm188_vm0, %v51_v24 }
  0x18   :  { %932 = vmatmul.mubr.msk.f32.gmra.mrb[2].mxu0 %vm76_vm1, %v47_v25  ;;  %984 = vmatprep.mubr.msk.f32.mxu1 %vm188_vm0, %v520_v0 }
  0x19   :  { %956 = vmatprep.mubr.msk.f32.mxu0 %vm188_vm0, %v290_v26 }
  0x1a   :  { %540 = vperm.xlu0 %1056, %v526_v34   ;;  %545 = vperm.xlu1 %1057, %v527_v35  }
  0x1e   :  { %659 = vperm.xlu0 %1056, %v653_v36   ;;  %664 = vperm.xlu1 %1057, %v654_v37  }
  0x22   :  { %669 = vperm.xlu0 %1056, %v655_v38   ;;  %674 = vperm.xlu1 %1057, %v656_v39  }
  0x26   :  { %784 = vperm.xlu0 %1056, %v778_v40   ;;  %789 = vperm.xlu1 %1057, %v779_v41  }
  0x2a   :  { %794 = vperm.xlu0 %1056, %v780_v42   ;;  %799 = vperm.xlu1 %1057, %v781_v43   ;;  %v650_v42 = vld [vmem:[%s1340_s8 + $0x8] sm:$0xff]  ;;  %v651_v43 = vld [vmem:[%s1340_s8 + $0x10] sm:$0xff] }
  0x2e   :  { %823 = vperm.xlu0 %1056, %v820_v44   ;;  %v652_v44 = vld [vmem:[%s1340_s8 + $0x18] sm:$0xff]  ;;  %s1085_s8 = smov [#allocation3]  }
  0x2f   :  { %s839_s10 = sshll.u32 %s1085_s8, 4  ;;  %s840_s10 = int_to_ptr.vmem [resolvable:$true] %s839_s10 }
  0x30   :  { %s1058_s0 = scalar_lea.vmem %s840_s10, 16  ;;  %s1062_s14 = scalar_lea.vmem %s840_s10, 32 }
  0x31   :  { %p1059_p0 = scmp.ne.s32.totalorder %s840_s10, %s1058_s0  ;;  %p1063_p1 = scmp.lt.s32.totalorder %s840_s10, %s840_s10 }
  0x32   :  { %p1064_p2 = scmp.lt.s32.totalorder %s1062_s14, %s1058_s0 }
  0x34   :  { %p1065_p3 = por %p1064_p2, %p1063_p1 }
  0x36   :  { %p1066_p4 = pnand %p1065_p3, %p1059_p0 }
  0x8d   :  { %v495_v1 = vpop.permute.xlu0 %494  ;;  %v505_v2 = vpop.permute.xlu1 %504 }
  0x91   :  { %v500_v3 = vpop.permute.xlu0 %499  ;;  %v510_v10 = vpop.permute.xlu1 %509 }
  0x95   :  { %v536_v24 = vpop.permute.xlu1 %535  ;;  %v531_v25 = vpop.permute.xlu0 %530 }
  0x99   :  { %v546_v31 = vpop.permute.xlu1 %545  ;;  %v541_v34 = vpop.permute.xlu0 %540 }
  0xe6   :  { %v944_v45 = vpop.f32.mrb[0].mxu1 }
  0xe7   :  { %v267_v46 = vpop.f32.mrb[1].mxu1  ;;  %v930_v47 = vpop.f32.mrb[0].mxu0 }
  0xe8   :  { %v1016_v48 = vpack.c.bf16 %v944_v45, %v267_v46  ;;  %v155_v49 = vpop.f32.mrb[1].mxu0  ;;  %v660_v45 = vpop.permute.xlu0 %659 }
  0xe9   :  { %v1024_v50 = vpack.c.bf16 %v930_v47, %v155_v49  ;;  %v665_v46 = vpop.permute.xlu1 %664 }
  0xea   :  { %v947_v51 = vpop.f32.mrb[2].mxu1  ;;  %1017 = vmatprep.subr.bf16.mxu0 %v1016_v48 }
  0xeb   :  { %v277_v52 = vpop.f32.mrb[3].mxu1  ;;  %1019 = vmatpush3.bf16.msra.mxu0 %v1016_v48  ;;  %v933_v53 = vpop.f32.mrb[2].mxu0 }
  0xec   :  { %v1020_v54 = vpack.c.bf16 %v947_v51, %v277_v52  ;;  %v165_v55 = vpop.f32.mrb[3].mxu0  ;;  %v670_v47 = vpop.permute.xlu0 %669 }
  0xed   :  { %v1028_v56 = vpack.c.bf16 %v933_v53, %v165_v55  ;;  %v675_v48 = vpop.permute.xlu1 %674 }
  0xee   :  { %1021 = vmatprep.subr.bf16.mxu0 %v1020_v54 }
  0xef   :  { %1023 = vmatpush3.bf16.msra.mxu0 %v1020_v54 }
  0xf0   :  { %1025 = vmatprep.subr.bf16.mxu0 %v1024_v50  ;;  %v785_v53 = vpop.permute.xlu0 %784 }
  0xf1   :  { %v790_v54 = vpop.permute.xlu1 %789 }
  0xf2   :  { %957 = vmatmul.mubr.msk.f32.vlgmr.msra.gmra.mrb[4].mxu0 %vm188_vm0, %v291_v57 }
  0xf3   :  { %1027 = vmatpush3.bf16.msra.mxu0 %v1024_v50  ;;  %959 = vmatprep.mubr.msk.f32.mxu0 %vm188_vm0, %v292_v58 }
  0xf4   :  { %1029 = vmatprep.subr.bf16.mxu0 %v1028_v56 }
  0xf6   :  { %960 = vmatmul.mubr.msk.f32.gmra.mrb[6].mxu0 %vm188_vm0, %v293_v59 }
  0xf7   :  { %1031 = vmatpush3.bf16.msra.mxu0 %v1028_v56  ;;  %970 = vmatprep.mubr.msk.f32.mxu0 %vm188_vm0, %v286_v60 }
  0xfa   :  { %971 = vmatmul.mubr.msk.f32.vlgmr.msra.gmra.mrb[4].mxu0 %vm188_vm0, %v287_v61 }
  0xfb   :  { %973 = vmatprep.mubr.msk.f32.mxu0 %vm188_vm0, %v288_v62 }
  0xfe   :  { %974 = vmatmul.mubr.msk.f32.gmra.mrb[6].mxu0 %vm188_vm0, %v289_v63 }
 0x1cd   :  { %v972_v4 = vpop.f32.mrb[4].mxu0 }
 0x1ce   :  { %v513_v6 = vadd.f32 %v972_v4, %v500_v3  ;;  %v469_v7 = vpop.f32.mrb[5].mxu0  ;;  %v795_v3 = vpop.permute.xlu0 %794 }
 0x1cf   :  { %v512_v8 = vadd.f32 %v495_v1, %v469_v7  ;;  %v800_v4 = vpop.permute.xlu1 %799 }
 0x1d0   :  { %v517_v9 = vmax.f32 %v513_v6, 0.0 }
 0x1d1   :  { %v516_v11 = vmax.f32 %v512_v8, 0.0  ;;  %v975_v12 = vpop.f32.mrb[6].mxu0 }
 0x1d2   :  { %v515_v13 = vadd.f32 %v975_v12, %v510_v10  ;;  %v479_v14 = vpop.f32.mrb[7].mxu0 }
 0x1d3   :  { %v1032_v15 = vpack.c.bf16 %v517_v9, %v516_v11  ;;  %v514_v16 = vadd.f32 %v505_v2, %v479_v14 }
 0x1d4   :  { %v519_v17 = vmax.f32 %v515_v13, 0.0 }
 0x1d5   :  { %v518_v18 = vmax.f32 %v514_v16, 0.0  ;;  %1033 = vmatprep.subr.bf16.mxu1 %v1032_v15  ;;  %v828_v16 = vsub.s32 0, %v1164_v5 }
 0x1d6   :  { %1035 = vmatpush3.bf16.msra.mxu1 %v1032_v15 }
 0x1d7   :  { %v1036_v19 = vpack.c.bf16 %v519_v17, %v518_v18  ;;  %v824_v18 = vpop.permute.xlu0 %823 }
 0x1d9   :  { %1037 = vmatprep.subr.bf16.mxu1 %v1036_v19 }
 0x1da   :  { %1039 = vmatpush3.bf16.msra.mxu1 %v1036_v19 }
 0x1dd   :  { %985 = vmatmul.mubr.msk.f32.vlgmr.msra.gmra.mrb[4].mxu1 %vm188_vm0, %v521_v20  ;;  %v829_v20 = vrot.slane %v824_v18, %v828_v16 }
 0x1de   :  { %987 = vmatprep.mubr.msk.f32.mxu1 %vm188_vm0, %v522_v21 }
 0x1e1   :  { %988 = vmatmul.mubr.msk.f32.gmra.mrb[6].mxu1 %vm188_vm0, %v523_v22 }
 0x1e2   :  { %998 = vmatprep.mubr.msk.f32.mxu1 %vm188_vm0, %v649_v23 }
 0x2b0   :  { %v986_v26 = vpop.f32.mrb[4].mxu1 }
 0x2b1   :  { %v632_v27 = vadd.f32 %v986_v26, %v536_v24  ;;  %v626_v28 = vpop.f32.mrb[5].mxu1 }
 0x2b2   :  { %v627_v29 = vadd.f32 %v626_v28, %v531_v25 }
 0x2b3   :  { %v646_v30 = vmax.f32 %v632_v27, 0.0 }
 0x2b4   :  { %v645_v32 = vmax.f32 %v627_v29, 0.0  ;;  %v989_v33 = vpop.f32.mrb[6].mxu1 }
 0x2b5   :  { %v642_v35 = vadd.f32 %v989_v33, %v546_v31  ;;  %v636_v36 = vpop.f32.mrb[7].mxu1 }
 0x2b6   :  { %v1040_v37 = vpack.c.bf16 %v646_v30, %v645_v32  ;;  %v637_v38 = vadd.f32 %v636_v36, %v541_v34 }
 0x2b7   :  { %v648_v39 = vmax.f32 %v642_v35, 0.0 }
 0x2b8   :  { %v647_v40 = vmax.f32 %v637_v38, 0.0  ;;  %1041 = vmatprep.subr.bf16.mxu1 %v1040_v37 }
 0x2b9   :  { %1043 = vmatpush3.bf16.msra.mxu1 %v1040_v37 }
 0x2ba   :  { %v1044_v41 = vpack.c.bf16 %v648_v39, %v647_v40 }
 0x2bc   :  { %1045 = vmatprep.subr.bf16.mxu1 %v1044_v41 }
 0x2bd   :  { %1047 = vmatpush3.bf16.msra.mxu1 %v1044_v41 }
 0x2c0   :  { %999 = vmatmul.mubr.msk.f32.vlgmr.msra.gmra.mrb[8].mxu1 %vm188_vm0, %v650_v42 }
 0x2c1   :  { %1001 = vmatprep.mubr.msk.f32.mxu1 %vm188_vm0, %v651_v43 }
 0x2c4   :  { %1002 = vmatmul.mubr.msk.f32.gmra.mrb[10].mxu1 %vm188_vm0, %v652_v44 }
 0x393   :  { %v1000_v49 = vpop.f32.mrb[8].mxu1 }
 0x394   :  { %v761_v50 = vadd.f32 %v1000_v49, %v665_v46  ;;  %v755_v51 = vpop.f32.mrb[9].mxu1 }
 0x395   :  { %v756_v52 = vadd.f32 %v755_v51, %v660_v45 }
 0x396   :  { %v775_v55 = vmax.f32 %v761_v50, 0.0 }
 0x397   :  { %v774_v56 = vmax.f32 %v756_v52, 0.0  ;;  %v1003_v57 = vpop.f32.mrb[10].mxu1 }
 0x398   :  { %v803_v58 = vmul.f32 %v790_v54, %v775_v55  ;;  %v771_v59 = vadd.f32 %v1003_v57, %v675_v48  ;;  %v765_v60 = vpop.f32.mrb[11].mxu1 }
 0x399   :  { %v802_v61 = vmul.f32 %v785_v53, %v774_v56  ;;  %v766_v62 = vadd.f32 %v765_v60, %v670_v47 }
 0x39a   :  { %v808_v63 = vsel %vm806_vm12, %v803_v58, 0.0  ;;  %v777_v0 = vmax.f32 %v771_v59, 0.0 }
 0x39b   :  { %v807_v1 = vsel %vm806_vm12, %v802_v61, 0.0  ;;  %v776_v2 = vmax.f32 %v766_v62, 0.0 }
 0x39c   :  { %v809_v6 = vadd.f32 %v808_v63, %v807_v1  ;;  %v805_v7 = vmul.f32 %v800_v4, %v777_v0 }
 0x39d   :  { %v804_v8 = vmul.f32 %v795_v3, %v776_v2 }
 0x39e   :  { %v812_v11 = vsel %vm806_vm12, %v805_v7, 0.0 }
 0x39f   :  { %v810_v9 = vsel %vm806_vm12, %v804_v8, 0.0 }
 0x3a0   :  { %v811_v10 = vadd.f32 %v810_v9, %v809_v6 }
 0x3a2   :  { %v813_v12 = vadd.f32 %v812_v11, %v811_v10 }
 0x3a4   :  { %v814_v13 = vrot.slane %v813_v12, 4 }
 0x3a6   :  { %v815_v14 = vadd.f32 %v814_v13, %v813_v12 }
 0x3a8   :  { %v816_v15 = vrot.slane %v815_v14, 2 }
 0x3aa   :  { %v817_v17 = vadd.f32 %v816_v15, %v815_v14 }
 0x3ac   :  { %v818_v19 = vrot.slane %v817_v17, 1 }
 0x3ae   :  { %v819_v21 = vadd.f32 %v818_v19, %v817_v17 }
 0x3b0   :  { %v830_v22 = vadd.f32 %v829_v20, %v819_v21 }
 0x3b2   :  { %832 = vst.msk [vmem:[#allocation3] sm:$0x1] %vm831_vm13, %v830_v22 }
 0x3b3   :  { %1069 = shalt.err (!%p1066_p4)
}
 0x3b4   :  { %s1070_s17 = scalar_lea.hbm %s1344_s12, 16 }
 0x3b5   :  { %p1071_p5 = scmp.ne.s32.totalorder %s1344_s12, %s1070_s17  ;;  %p1074_p6 = scmp.lt.u32.totalorder %s1070_s17, %s1344_s12 }
 0x3b7   :  { %p1076_p7 = pnand %p1074_p6, %p1071_p5 }
 0x3b9   :  { %1079 = shalt.err (!%p1076_p7)
}
 0x3ba   :  { %842 = dma.vmem_to_hbm [thread:$0]  %s840_s10, 16, %s1344_s12, [#allocation4]  }
 0x3bb   :  { %1080 = dma.done.wait [#allocation4], 16  }
 0x3bc   :  { %1081 = vsyncadd [#allocation4], 4294967280 }
 0x3bd   :  { %846 = vsyncpa [#allocation4], 1 }

</bundles_post_ra>
